<compile_context>
chip_gen: v5e
topology: v5e:2x2
jax: 0.10.0
libtpu: 0.0.40
codegen_flags: <defaults>
</compile_context>

<pallas_src>
import functools

import jax
import jax.numpy as jnp
from jax import lax
from jax.experimental import pallas as pl
from jax.experimental.pallas import tpu as pltpu

ALPHA = 10.0   # SelfLoss(alpha=10)
BETA = 2.0     # SelfLoss(beta=2)


def _pick_tile(dim, cap, aligns=(128, 8)):
    """Largest divisor of `dim` <= cap that is a multiple of one of `aligns`.
    Falls back to the full dimension (always a legal block)."""
    if dim <= cap:
        return dim
    for align in aligns:
        t = (cap // align) * align
        while t >= align:
            if dim % t == 0:
                return t
            t -= align
    return dim


# ---------------------------------------------------------------------------
# Kernel 1: proxy logits, margin loss, precision, mean proxy pos/neg.
# grid = (N tiles, C tiles); C is the inner accumulation axis.
# ---------------------------------------------------------------------------
def _proxy_loss_kernel(x_ref, w_ref, t_ref, out_ref,
                       phi_acc, expsum, maxneg, scal, *, n_total, c_total):
    i = pl.program_id(0)
    k = pl.program_id(1)
    nk = pl.num_programs(1)
    last = jnp.logical_and(i == pl.num_programs(0) - 1, k == nk - 1)

    @pl.when(jnp.logical_and(i == 0, k == 0))
    def _():
        scal[0] = 0.0    # sum over masked rows of (-loss_pos + loss_neg/alpha)
        scal[1] = 0.0    # number of masked rows
        scal[2] = 0.0    # sum of clamped cos at target entries
        scal[3] = 0.0    # sum of clamped cos over all entries

    @pl.when(k == 0)
    def _():
        phi_acc[...] = jnp.zeros_like(phi_acc)
        expsum[...] = jnp.zeros_like(expsum)
        maxneg[...] = jnp.full_like(maxneg, -2.0)   # clamped cos >= -1 > -2

    # bf16 MXU matmul, f32 accumulation (native MXU rate on v5e/v6e/v7x).
    x = x_ref[...]                                   # (tn, D) bf16
    w = w_ref[...]                                   # (tc, D) bf16
    t = t_ref[...]                                   # (tn, 1) int32
    tn, tc = x.shape[0], w.shape[0]

    logits = lax.dot_general(x, w, (((1,), (1,)), ((), ())),
                             preferred_element_type=jnp.float32)   # (tn, tc)
    cos = jnp.clip(logits, -1.0, 1.0)

    col = k * tc + lax.broadcasted_iota(jnp.int32, (tn, tc), 1)
    onehot = col == t                                               # bool

    # phi accumulates the *un-clamped* target-column logit (torch einsum path).
    phi_acc[...] += jnp.sum(jnp.where(onehot, logits, 0.0), axis=1, keepdims=True)
    # Masked logsumexp accumulator: phi is never exponentiated and the clamp
    # bounds exp(cos*alpha) <= e^10, so plain f32 accumulation is safe.
    expsum[...] += jnp.sum(jnp.where(onehot, 0.0, jnp.exp(cos * ALPHA)),
                           axis=1, keepdims=True)
    maxneg[...] = jnp.maximum(
        maxneg[...],
        jnp.max(jnp.where(onehot, -2.0, cos), axis=1, keepdims=True))
    # Complement-sum proxy statistics: positives + full-tile sum only.
    scal[2] += jnp.sum(jnp.where(onehot, cos, 0.0))
    scal[3] += jnp.sum(cos)

    @pl.when(k == nk - 1)
    def _():
        phi = phi_acc[...] - BETA                        # (tn, 1) == loss_pos
        lneg = jnp.log(expsum[...])                      # (tn, 1) == loss_neg
        mask = maxneg[...] > phi                         # max(output) - loss_pos > 0
        per_row = jnp.where(mask, -phi + lneg * (1.0 / ALPHA), 0.0)
        scal[0] += jnp.sum(per_row)
        scal[1] += jnp.sum(mask.astype(jnp.float32))

    @pl.when(last)
    def _():
        masked = scal[1]
        out_ref[0] = scal[0] / jnp.maximum(masked, 1.0)                 # loss
        # argmax(output) == target  <=>  phi >= max over negatives
        # (identical to torch argmax except on exact float ties).
        out_ref[1] = (n_total - masked) / n_total                       # prec
        out_ref[2] = scal[2] / n_total                                  # mean_proxy_pos
        out_ref[3] = (scal[3] - scal[2]) / (n_total * (c_total - 1.0))  # mean_proxy_neg


# ---------------------------------------------------------------------------
# Kernel 2: pairwise sample similarities over a 1-D grid of upper-triangular
# tile pairs (scalar-prefetched block-index tables ii/jj).  Off-diagonal tiles
# contribute twice (sim_mat and sim_label are symmetric), so both DMA traffic
# and MXU work are ~halved vs. a dense (N/tp, N/tp) grid.
# ---------------------------------------------------------------------------
def _pair_sim_kernel(ii_ref, jj_ref, xi_ref, xj_ref, ti_ref, tj_ref,
                     out_ref, scal, *, n_total):
    s = pl.program_id(0)
    last = s == pl.num_programs(0) - 1

    @pl.when(s == 0)
    def _():
        scal[0] = 0.0     # sum(sim_mat)
        scal[1] = 0.0     # sum(sim_mat * sim_label)
        scal[2] = 0.0     # sum(sim_label)

    xi = xi_ref[...]                                      # (tp, D) bf16
    xj = xj_ref[...]                                      # (tp, D) bf16
    sim = lax.dot_general(xi, xj, (((1,), (1,)), ((), ())),
                          preferred_element_type=jnp.float32)       # (tp, tp)
    same = (ti_ref[...] == tj_ref[...]).astype(jnp.float32)         # (tp,1)==(1,tp)
    wgt = jnp.where(ii_ref[s] == jj_ref[s], 1.0, 2.0)
    scal[0] += wgt * jnp.sum(sim)
    scal[1] += wgt * jnp.sum(sim * same)
    scal[2] += wgt * jnp.sum(same)

    @pl.when(last)
    def _():
        pos = scal[2]
        out_ref[0] = scal[1] / pos                                      # mean_pos_sim
        out_ref[1] = (scal[0] - scal[1]) / (n_total * n_total - pos)    # mean_neg_sim


# ---------------------------------------------------------------------------
# Wrapper
# ---------------------------------------------------------------------------
@functools.partial(jax.jit, static_argnames=("tn_cap", "tc_cap", "tp_cap"))
def self_loss_forward(inputs, targets, kernel, *,
                      tn_cap=512, tc_cap=512, tp_cap=512):
    # TODO(synk): the torch forward's conditional host-side debug print of the
    # mean proxy-proxy similarity (kernel @ kernel.T) is a side effect only and
    # is not reproduced here.
    n, d = inputs.shape
    c = kernel.shape[0]
    t_col = targets.reshape(n, 1).astype(jnp.int32)
    t_row = targets.reshape(1, n).astype(jnp.int32)

    # bf16 once in the wrapper: matmuls were already bf16, this halves HBM traffic.
    x_bf = inputs.astype(jnp.bfloat16)
    w_bf = kernel.astype(jnp.bfloat16)

    tn = _pick_tile(n, tn_cap)                       # row tile
    tc = _pick_tile(c, tc_cap)                       # class (lane) tile
    tp = _pick_tile(n, tp_cap, aligns=(128,))        # pairwise tile (lane-aligned)

    cparams2d = pltpu.CompilerParams(
        dimension_semantics=("arbitrary", "arbitrary"),
        vmem_limit_bytes=32 * 1024 * 1024)
    cparams1d = pltpu.CompilerParams(
        dimension_semantics=("arbitrary",),
        vmem_limit_bytes=32 * 1024 * 1024)

    proxy = pl.pallas_call(
        functools.partial(_proxy_loss_kernel,
                          n_total=float(n), c_total=float(c)),
        out_shape=jax.ShapeDtypeStruct((4,), jnp.float32),
        grid_spec=pltpu.PrefetchScalarGridSpec(
            num_scalar_prefetch=0,
            grid=(n // tn, c // tc),
            in_specs=[
                pl.BlockSpec((tn, d), lambda i, k: (i, 0)),
                pl.BlockSpec((tc, d), lambda i, k: (k, 0)),
                pl.BlockSpec((tn, 1), lambda i, k: (i, 0)),
            ],
            out_specs=pl.BlockSpec(memory_space=pltpu.MemorySpace.SMEM),
            scratch_shapes=[
                pltpu.VMEM((tn, 1), jnp.float32),    # phi accumulator
                pltpu.VMEM((tn, 1), jnp.float32),    # sum exp(alpha*cos) over negatives
                pltpu.VMEM((tn, 1), jnp.float32),    # running max over negatives
                pltpu.SMEM((4,), jnp.float32),       # scalar partial sums
            ]),
        compiler_params=cparams2d,
    )(x_bf, w_bf, t_col)

    # Upper-triangular tile-pair schedule (static under jit): xi stays resident
    # across each row of pairs, xj is fetched once per (i<=j) pair.
    nt = n // tp
    pair_i, pair_j = [], []
    for a in range(nt):
        for b in range(a, nt):
            pair_i.append(a)
            pair_j.append(b)
    pair_i = jnp.asarray(pair_i, dtype=jnp.int32)
    pair_j = jnp.asarray(pair_j, dtype=jnp.int32)

    sims = pl.pallas_call(
        functools.partial(_pair_sim_kernel, n_total=float(n)),
        out_shape=jax.ShapeDtypeStruct((2,), jnp.float32),
        grid_spec=pltpu.PrefetchScalarGridSpec(
            num_scalar_prefetch=2,
            grid=(len(pair_i),),
            in_specs=[
                pl.BlockSpec((tp, d), lambda s, ii, jj: (ii[s], 0)),
                pl.BlockSpec((tp, d), lambda s, ii, jj: (jj[s], 0)),
                pl.BlockSpec((tp, 1), lambda s, ii, jj: (ii[s], 0)),
                pl.BlockSpec((1, tp), lambda s, ii, jj: (0, jj[s])),
            ],
            out_specs=pl.BlockSpec(memory_space=pltpu.MemorySpace.SMEM),
            scratch_shapes=[pltpu.SMEM((3,), jnp.float32)]),
        compiler_params=cparams1d,
    )(pair_i, pair_j, x_bf, x_bf, t_col, t_row)

    return proxy[0], proxy[1], proxy[2], proxy[3], sims[0], sims[1]


# ---------------------------------------------------------------------------
# Pure-JAX reference (faithful replica of the torch forward) for verification.
# ---------------------------------------------------------------------------
def self_loss_reference(inputs, targets, kernel):
    n = inputs.shape[0]
    c = kernel.shape[0]
    cos_theta = jnp.clip(inputs @ kernel.T, -1.0, 1.0)
    onehot = jax.nn.one_hot(targets, c, dtype=jnp.float32)
    phi = jnp.sum(inputs * kernel[targets], axis=1) - BETA
    mean_proxy_pos = jnp.sum(cos_theta * onehot) / jnp.sum(onehot)
    mean_proxy_neg = jnp.sum(cos_theta * (1 - onehot)) / jnp.sum(1 - onehot)
    output = jnp.where(onehot > 0, phi[:, None], cos_theta)
    loss_pos = jnp.sum(output * onehot, axis=1)
    loss_neg = jnp.log(jnp.sum(jnp.exp(output * ALPHA) * (1 - onehot), axis=1))
    loss_mask = jnp.max(output, axis=1) - loss_pos > 0
    denom = jnp.maximum(jnp.sum(loss_mask.astype(jnp.float32)), 1.0)
    loss = jnp.sum(jnp.where(loss_mask, -loss_pos + loss_neg / ALPHA, 0.0)) / denom
    pred = jnp.argmax(output, axis=1)
    prec = jnp.mean((pred == targets).astype(jnp.float32))
    sim_mat = inputs @ inputs.T
    sim_label = (targets[:, None] == targets[None, :]).astype(jnp.float32)
    mean_pos_sim = jnp.sum(sim_mat * sim_label) / jnp.sum(sim_label)
    mean_neg_sim = jnp.sum(sim_mat * (1 - sim_label)) / jnp.sum(1 - sim_label)
    return loss, prec, mean_proxy_pos, mean_proxy_neg, mean_pos_sim, mean_neg_sim


def _row_normalize(x):
    return x / jnp.linalg.norm(x, axis=1, keepdims=True)


def _check(res, ref, rtol=1e-2, atol=5e-3):
    # bf16 MXU matmuls in the kernel vs f32 reference -> loose-ish tolerances.
    for got, want in zip(res, ref):
        assert jnp.allclose(got, want, rtol=rtol, atol=atol), (got, want)


if __name__ == "__main__":
    key = jax.random.PRNGKey(0)
    k_w, k_x, k_t = jax.random.split(key, 3)

    # Primary small test (single-tile grids).
    N, D, C = 8, 128, 32
    # nn.Parameter(C, D).uniform_(-1,1).renorm_(2,0,1e-5).mul_(1e5) == unit-norm rows
    kernel = _row_normalize(
        jax.random.uniform(k_w, (C, D), jnp.float32, minval=-1.0, maxval=1.0))
    inputs = _row_normalize(jax.random.normal(k_x, (N, D), jnp.float32))
    targets = jax.random.randint(k_t, (N,), 0, C, dtype=jnp.int32)

    res = jax.block_until_ready(self_loss_forward(inputs, targets, kernel))
    _check(res, self_loss_reference(inputs, targets, kernel))

    # Multi-tile test: exercises the (N,C) accumulation grid, the triangular
    # pairwise grid (3 tile pairs) and the per-tile init/finalize paths.
    N2, D2, C2 = 256, 128, 384
    kernel2 = _row_normalize(
        jax.random.uniform(k_w, (C2, D2), jnp.float32, minval=-1.0, maxval=1.0))
    inputs2 = _row_normalize(jax.random.normal(k_x, (N2, D2), jnp.float32))
    targets2 = jax.random.randint(k_t, (N2,), 0, C2, dtype=jnp.int32)

    res2 = jax.block_until_ready(
        self_loss_forward(inputs2, targets2, kernel2,
                          tn_cap=128, tc_cap=128, tp_cap=128))
    _check(res2, self_loss_reference(inputs2, targets2, kernel2))

    print("KERNEL_OK")
</pallas_src>

<mosaic_0001>
module attributes {stable_mosaic.version = 11 : i64} {
  func.func @_proxy_loss_kernel(%arg0: i32, %arg1: i32, %arg2: memref<8x128xbf16, #tpu.memory_space<vmem>>, %arg3: memref<32x128xbf16, #tpu.memory_space<vmem>>, %arg4: memref<8x1xi32, #tpu.memory_space<vmem>>, %arg5: memref<4xf32, #tpu.memory_space<smem>>, %arg6: memref<8x1xf32, #tpu.memory_space<vmem>>, %arg7: memref<8x1xf32, #tpu.memory_space<vmem>>, %arg8: memref<8x1xf32, #tpu.memory_space<vmem>>, %arg9: memref<4xf32, #tpu.memory_space<smem>>) attributes {dimension_semantics = [#tpu.dimension_semantics<arbitrary>, #tpu.dimension_semantics<arbitrary>], iteration_bounds = array<i64: 1, 1>, scalar_prefetch = 0 : i64, scratch_operands = 4 : i64, tpu.core_type = #tpu.core_type<tc>, window_params = [{transform_indices = @transform_0, window_bounds = array<i64: 8, 128>}, {transform_indices = @transform_1, window_bounds = array<i64: 32, 128>}, {transform_indices = @transform_2, window_bounds = array<i64: 8, 1>}, {transform_indices = @transform_3, window_bounds = array<i64: 4>}]} {
    %c0_i32 = arith.constant 0 : i32
    %0 = arith.cmpi eq, %arg0, %c0_i32 : i32
    %c0_i32_0 = arith.constant 0 : i32
    %1 = arith.cmpi eq, %arg1, %c0_i32_0 : i32
    %2 = arith.andi %0, %1 : i1
    %c0_i32_1 = arith.constant 0 : i32
    %3 = arith.cmpi eq, %arg0, %c0_i32_1 : i32
    %c0_i32_2 = arith.constant 0 : i32
    %4 = arith.cmpi eq, %arg1, %c0_i32_2 : i32
    %5 = arith.andi %3, %4 : i1
    %6 = arith.extui %5 : i1 to i32
    %c0_i32_3 = arith.constant 0 : i32
    %7 = arith.cmpi ne, %6, %c0_i32_3 : i32
    scf.if %7 {
      %cst_40 = arith.constant 0.000000e+00 : f32
      %c0_41 = arith.constant 0 : index
      %70 = memref.load %arg9[%c0_41] : memref<4xf32, #tpu.memory_space<smem>>
      memref.store %cst_40, %arg9[%c0_41] : memref<4xf32, #tpu.memory_space<smem>>
      %cst_42 = arith.constant 0.000000e+00 : f32
      %c1 = arith.constant 1 : index
      %71 = memref.load %arg9[%c1] : memref<4xf32, #tpu.memory_space<smem>>
      memref.store %cst_42, %arg9[%c1] : memref<4xf32, #tpu.memory_space<smem>>
      %cst_43 = arith.constant 0.000000e+00 : f32
      %c2_44 = arith.constant 2 : index
      %72 = memref.load %arg9[%c2_44] : memref<4xf32, #tpu.memory_space<smem>>
      memref.store %cst_43, %arg9[%c2_44] : memref<4xf32, #tpu.memory_space<smem>>
      %cst_45 = arith.constant 0.000000e+00 : f32
      %c3_46 = arith.constant 3 : index
      %73 = memref.load %arg9[%c3_46] : memref<4xf32, #tpu.memory_space<smem>>
      memref.store %cst_45, %arg9[%c3_46] : memref<4xf32, #tpu.memory_space<smem>>
    } else {
    }
    %c0_i32_4 = arith.constant 0 : i32
    %8 = arith.cmpi eq, %arg1, %c0_i32_4 : i32
    %9 = arith.extui %8 : i1 to i32
    %c0_i32_5 = arith.constant 0 : i32
    %10 = arith.cmpi ne, %9, %c0_i32_5 : i32
    scf.if %10 {
      %cst_40 = arith.constant 0.000000e+00 : f32
      %70 = vector.broadcast %cst_40 : f32 to vector<8x1xf32>
      %c0_41 = arith.constant 0 : index
      %c0_42 = arith.constant 0 : index
      %71 = vector.load %arg6[%c0_41, %c0_42] : memref<8x1xf32, #tpu.memory_space<vmem>>, vector<8x1xf32>
      tpu.vector_store %arg6[%c0_41, %c0_42], %70 {strides = array<i32>} : memref<8x1xf32, #tpu.memory_space<vmem>>, vector<8x1xf32>,
      %cst_43 = arith.constant 0.000000e+00 : f32
      %72 = vector.broadcast %cst_43 : f32 to vector<8x1xf32>
      %c0_44 = arith.constant 0 : index
      %c0_45 = arith.constant 0 : index
      %73 = vector.load %arg7[%c0_44, %c0_45] : memref<8x1xf32, #tpu.memory_space<vmem>>, vector<8x1xf32>
      tpu.vector_store %arg7[%c0_44, %c0_45], %72 {strides = array<i32>} : memref<8x1xf32, #tpu.memory_space<vmem>>, vector<8x1xf32>,
      %cst_46 = arith.constant -2.000000e+00 : f32
      %74 = vector.broadcast %cst_46 : f32 to vector<8x1xf32>
      %c0_47 = arith.constant 0 : index
      %c0_48 = arith.constant 0 : index
      %75 = vector.load %arg8[%c0_47, %c0_48] : memref<8x1xf32, #tpu.memory_space<vmem>>, vector<8x1xf32>
      tpu.vector_store %arg8[%c0_47, %c0_48], %74 {strides = array<i32>} : memref<8x1xf32, #tpu.memory_space<vmem>>, vector<8x1xf32>,
    } else {
    }
    %c0 = arith.constant 0 : index
    %c0_6 = arith.constant 0 : index
    %11 = vector.load %arg2[%c0, %c0_6] : memref<8x128xbf16, #tpu.memory_space<vmem>>, vector<8x128xbf16>
    %c0_7 = arith.constant 0 : index
    %c0_8 = arith.constant 0 : index
    %12 = vector.load %arg3[%c0_7, %c0_8] : memref<32x128xbf16, #tpu.memory_space<vmem>>, vector<32x128xbf16>
    %c0_9 = arith.constant 0 : index
    %c0_10 = arith.constant 0 : index
    %13 = vector.load %arg4[%c0_9, %c0_10] : memref<8x1xi32, #tpu.memory_space<vmem>>, vector<8x1xi32>
    %cst = arith.constant dense<0.000000e+00> : vector<8x32xf32>
    %14 = tpu.matmul %11, %12, %cst {dimension_numbers = #tpu.dot_dimension_numbers<[1], [1], [0], [0], [0, 0, 1, 0], [], []>} : vector<8x128xbf16>, vector<32x128xbf16>, vector<8x32xf32> -> vector<8x32xf32>
    %cst_11 = arith.constant -1.000000e+00 : f32
    %cst_12 = arith.constant 1.000000e+00 : f32
    %15 = vector.broadcast %cst_11 : f32 to vector<8x32xf32>
    %16 = arith.maximumf %15, %14 : vector<8x32xf32>
    %17 = vector.broadcast %cst_12 : f32 to vector<8x32xf32>
    %18 = arith.minimumf %17, %16 : vector<8x32xf32>
    %c32_i32 = arith.constant 32 : i32
    %19 = arith.muli %arg1, %c32_i32 : i32
    %20 = tpu.iota {dimensions = array<i32: 1>} : vector<8x32xi32>
    %21 = vector.broadcast %19 : i32 to vector<8x32xi32>
    %22 = arith.addi %21, %20 : vector<8x32xi32>
    %23 = vector.broadcast %13 : vector<8x1xi32> to vector<8x32xi32>
    %24 = arith.cmpi eq, %22, %23 : vector<8x32xi32>
    %c0_13 = arith.constant 0 : index
    %c0_14 = arith.constant 0 : index
    %25 = vector.load %arg6[%c0_13, %c0_14] : memref<8x1xf32, #tpu.memory_space<vmem>>, vector<8x1xf32>
    %cst_15 = arith.constant 0.000000e+00 : f32
    %26 = vector.broadcast %cst_15 : f32 to vector<8x32xf32>
    %27 = arith.select %24, %14, %26 : vector<8x32xi1>, vector<8x32xf32>
    %cst_16 = arith.constant dense<0.000000e+00> : vector<8xf32>
    %28 = vector.multi_reduction <add>, %27, %cst_16 [1] : vector<8x32xf32> to vector<8xf32>
    %29 = vector.shape_cast %28 : vector<8xf32> to vector<8x1xf32>
    %30 = arith.addf %25, %29 : vector<8x1xf32>
    %c0_17 = arith.constant 0 : index
    %c0_18 = arith.constant 0 : index
    %31 = vector.load %arg6[%c0_17, %c0_18] : memref<8x1xf32, #tpu.memory_space<vmem>>, vector<8x1xf32>
    tpu.vector_store %arg6[%c0_17, %c0_18], %30 {strides = array<i32>} : memref<8x1xf32, #tpu.memory_space<vmem>>, vector<8x1xf32>,
    %c0_19 = arith.constant 0 : index
    %c0_20 = arith.constant 0 : index
    %32 = vector.load %arg7[%c0_19, %c0_20] : memref<8x1xf32, #tpu.memory_space<vmem>>, vector<8x1xf32>
    %cst_21 = arith.constant 1.000000e+01 : f32
    %33 = vector.broadcast %cst_21 : f32 to vector<8x32xf32>
    %34 = arith.mulf %18, %33 : vector<8x32xf32>
    %35 = math.exp %34 : vector<8x32xf32>
    %cst_22 = arith.constant 0.000000e+00 : f32
    %36 = vector.broadcast %cst_22 : f32 to vector<8x32xf32>
    %37 = arith.select %24, %36, %35 : vector<8x32xi1>, vector<8x32xf32>
    %cst_23 = arith.constant dense<0.000000e+00> : vector<8xf32>
    %38 = vector.multi_reduction <add>, %37, %cst_23 [1] : vector<8x32xf32> to vector<8xf32>
    %39 = vector.shape_cast %38 : vector<8xf32> to vector<8x1xf32>
    %40 = arith.addf %32, %39 : vector<8x1xf32>
    %c0_24 = arith.constant 0 : index
    %c0_25 = arith.constant 0 : index
    %41 = vector.load %arg7[%c0_24, %c0_25] : memref<8x1xf32, #tpu.memory_space<vmem>>, vector<8x1xf32>
    tpu.vector_store %arg7[%c0_24, %c0_25], %40 {strides = array<i32>} : memref<8x1xf32, #tpu.memory_space<vmem>>, vector<8x1xf32>,
    %c0_26 = arith.constant 0 : index
    %c0_27 = arith.constant 0 : index
    %42 = vector.load %arg8[%c0_26, %c0_27] : memref<8x1xf32, #tpu.memory_space<vmem>>, vector<8x1xf32>
    %cst_28 = arith.constant -2.000000e+00 : f32
    %43 = vector.broadcast %cst_28 : f32 to vector<8x32xf32>
    %44 = arith.select %24, %43, %18 : vector<8x32xi1>, vector<8x32xf32>
    %cst_29 = arith.constant dense<0xFF800000> : vector<8xf32>
    %45 = vector.multi_reduction <maximumf>, %44, %cst_29 [1] : vector<8x32xf32> to vector<8xf32>
    %46 = vector.shape_cast %45 : vector<8xf32> to vector<8x1xf32>
    %47 = arith.maximumf %42, %46 : vector<8x1xf32>
    %c0_30 = arith.constant 0 : index
    %c0_31 = arith.constant 0 : index
    %48 = vector.load %arg8[%c0_30, %c0_31] : memref<8x1xf32, #tpu.memory_space<vmem>>, vector<8x1xf32>
    tpu.vector_store %arg8[%c0_30, %c0_31], %47 {strides = array<i32>} : memref<8x1xf32, #tpu.memory_space<vmem>>, vector<8x1xf32>,
    %c2 = arith.constant 2 : index
    %49 = memref.load %arg9[%c2] : memref<4xf32, #tpu.memory_space<smem>>
    %cst_32 = arith.constant 0.000000e+00 : f32
    %50 = vector.broadcast %cst_32 : f32 to vector<8x32xf32>
    %51 = arith.select %24, %18, %50 : vector<8x32xi1>, vector<8x32xf32>
    %52 = vector.shape_cast %51 : vector<8x32xf32> to vector<1x8x32xf32>
    %cst_33 = arith.constant dense<0.000000e+00> : vector<1xf32>
    %53 = vector.multi_reduction <add>, %52, %cst_33 [1, 2] : vector<1x8x32xf32> to vector<1xf32>
    %54 = vector.shape_cast %53 : vector<1xf32> to vector<1x1x1xf32>
    %55 = vector.extract %54[0, 0, 0] : f32 from vector<1x1x1xf32>
    %56 = arith.addf %49, %55 : f32
    %c2_34 = arith.constant 2 : index
    %57 = memref.load %arg9[%c2_34] : memref<4xf32, #tpu.memory_space<smem>>
    memref.store %56, %arg9[%c2_34] : memref<4xf32, #tpu.memory_space<smem>>
    %c3 = arith.constant 3 : index
    %58 = memref.load %arg9[%c3] : memref<4xf32, #tpu.memory_space<smem>>
    %59 = vector.shape_cast %18 : vector<8x32xf32> to vector<1x8x32xf32>
    %cst_35 = arith.constant dense<0.000000e+00> : vector<1xf32>
    %60 = vector.multi_reduction <add>, %59, %cst_35 [1, 2] : vector<1x8x32xf32> to vector<1xf32>
    %61 = vector.shape_cast %60 : vector<1xf32> to vector<1x1x1xf32>
    %62 = vector.extract %61[0, 0, 0] : f32 from vector<1x1x1xf32>
    %63 = arith.addf %58, %62 : f32
    %c3_36 = arith.constant 3 : index
    %64 = memref.load %arg9[%c3_36] : memref<4xf32, #tpu.memory_space<smem>>
    memref.store %63, %arg9[%c3_36] : memref<4xf32, #tpu.memory_space<smem>>
    %c0_i32_37 = arith.constant 0 : i32
    %65 = arith.cmpi eq, %arg1, %c0_i32_37 : i32
    %66 = arith.extui %65 : i1 to i32
    %c0_i32_38 = arith.constant 0 : i32
    %67 = arith.cmpi ne, %66, %c0_i32_38 : i32
    scf.if %67 {
      %c0_40 = arith.constant 0 : index
      %c0_41 = arith.constant 0 : index
      %70 = vector.load %arg6[%c0_40, %c0_41] : memref<8x1xf32, #tpu.memory_space<vmem>>, vector<8x1xf32>
      %cst_42 = arith.constant 2.000000e+00 : f32
      %71 = vector.broadcast %cst_42 : f32 to vector<8x1xf32>
      %72 = arith.subf %70, %71 : vector<8x1xf32>
      %c0_43 = arith.constant 0 : index
      %c0_44 = arith.constant 0 : index
      %73 = vector.load %arg7[%c0_43, %c0_44] : memref<8x1xf32, #tpu.memory_space<vmem>>, vector<8x1xf32>
      %74 = math.log %73 : vector<8x1xf32>
      %c0_45 = arith.constant 0 : index
      %c0_46 = arith.constant 0 : index
      %75 = vector.load %arg8[%c0_45, %c0_46] : memref<8x1xf32, #tpu.memory_space<vmem>>, vector<8x1xf32>
      %76 = arith.cmpf ogt, %75, %72 : vector<8x1xf32>
      %cst_47 = arith.constant 0.000000e+00 : f32
      %77 = vector.broadcast %cst_47 : f32 to vector<8x1xf32>
      %78 = arith.subf %77, %72 : vector<8x1xf32>
      %cst_48 = arith.constant 1.000000e-01 : f32
      %79 = vector.broadcast %cst_48 : f32 to vector<8x1xf32>
      %80 = arith.mulf %74, %79 : vector<8x1xf32>
      %81 = arith.addf %78, %80 : vector<8x1xf32>
      %cst_49 = arith.constant 0.000000e+00 : f32
      %82 = vector.broadcast %cst_49 : f32 to vector<8x1xf32>
      %83 = arith.select %76, %81, %82 : vector<8x1xi1>, vector<8x1xf32>
      %c0_50 = arith.constant 0 : index
      %84 = memref.load %arg9[%c0_50] : memref<4xf32, #tpu.memory_space<smem>>
      %85 = vector.shape_cast %83 : vector<8x1xf32> to vector<1x8x1xf32>
      %cst_51 = arith.constant dense<0.000000e+00> : vector<1xf32>
      %86 = vector.multi_reduction <add>, %85, %cst_51 [1, 2] : vector<1x8x1xf32> to vector<1xf32>
      %87 = vector.shape_cast %86 : vector<1xf32> to vector<1x1x1xf32>
      %88 = vector.extract %87[0, 0, 0] : f32 from vector<1x1x1xf32>
      %89 = arith.addf %84, %88 : f32
      %c0_52 = arith.constant 0 : index
      %90 = memref.load %arg9[%c0_52] : memref<4xf32, #tpu.memory_space<smem>>
      memref.store %89, %arg9[%c0_52] : memref<4xf32, #tpu.memory_space<smem>>
      %c1 = arith.constant 1 : index
      %91 = memref.load %arg9[%c1] : memref<4xf32, #tpu.memory_space<smem>>
      %92 = arith.extui %76 : vector<8x1xi1> to vector<8x1xi32>
      %93 = arith.sitofp %92 : vector<8x1xi32> to vector<8x1xf32>
      %94 = vector.shape_cast %93 : vector<8x1xf32> to vector<1x8x1xf32>
      %cst_53 = arith.constant dense<0.000000e+00> : vector<1xf32>
      %95 = vector.multi_reduction <add>, %94, %cst_53 [1, 2] : vector<1x8x1xf32> to vector<1xf32>
      %96 = vector.shape_cast %95 : vector<1xf32> to vector<1x1x1xf32>
      %97 = vector.extract %96[0, 0, 0] : f32 from vector<1x1x1xf32>
      %98 = arith.addf %91, %97 : f32
      %c1_54 = arith.constant 1 : index
      %99 = memref.load %arg9[%c1_54] : memref<4xf32, #tpu.memory_space<smem>>
      memref.store %98, %arg9[%c1_54] : memref<4xf32, #tpu.memory_space<smem>>
    } else {
    }
    %68 = arith.extui %2 : i1 to i32
    %c0_i32_39 = arith.constant 0 : i32
    %69 = arith.cmpi ne, %68, %c0_i32_39 : i32
    scf.if %69 {
      %c1 = arith.constant 1 : index
      %70 = memref.load %arg9[%c1] : memref<4xf32, #tpu.memory_space<smem>>
      %c0_40 = arith.constant 0 : index
      %71 = memref.load %arg9[%c0_40] : memref<4xf32, #tpu.memory_space<smem>>
      %cst_41 = arith.constant 1.000000e+00 : f32
      %72 = arith.maximumf %70, %cst_41 : f32
      %73 = arith.divf %71, %72 : f32
      %c0_42 = arith.constant 0 : index
      %74 = memref.load %arg5[%c0_42] : memref<4xf32, #tpu.memory_space<smem>>
      memref.store %73, %arg5[%c0_42] : memref<4xf32, #tpu.memory_space<smem>>
      %cst_43 = arith.constant 8.000000e+00 : f32
      %75 = arith.subf %cst_43, %70 : f32
      %cst_44 = arith.constant 8.000000e+00 : f32
      %76 = arith.divf %75, %cst_44 : f32
      %c1_45 = arith.constant 1 : index
      %77 = memref.load %arg5[%c1_45] : memref<4xf32, #tpu.memory_space<smem>>
      memref.store %76, %arg5[%c1_45] : memref<4xf32, #tpu.memory_space<smem>>
      %c2_46 = arith.constant 2 : index
      %78 = memref.load %arg9[%c2_46] : memref<4xf32, #tpu.memory_space<smem>>
      %cst_47 = arith.constant 8.000000e+00 : f32
      %79 = arith.divf %78, %cst_47 : f32
      %c2_48 = arith.constant 2 : index
      %80 = memref.load %arg5[%c2_48] : memref<4xf32, #tpu.memory_space<smem>>
      memref.store %79, %arg5[%c2_48] : memref<4xf32, #tpu.memory_space<smem>>
      %c3_49 = arith.constant 3 : index
      %81 = memref.load %arg9[%c3_49] : memref<4xf32, #tpu.memory_space<smem>>
      %c2_50 = arith.constant 2 : index
      %82 = memref.load %arg9[%c2_50] : memref<4xf32, #tpu.memory_space<smem>>
      %83 = arith.subf %81, %82 : f32
      %cst_51 = arith.constant 2.480000e+02 : f32
      %84 = arith.divf %83, %cst_51 : f32
      %c3_52 = arith.constant 3 : index
      %85 = memref.load %arg5[%c3_52] : memref<4xf32, #tpu.memory_space<smem>>
      memref.store %84, %arg5[%c3_52] : memref<4xf32, #tpu.memory_space<smem>>
    } else {
    }
    return
  }
  func.func @transform_0(%arg0: i32, %arg1: i32) -> (i32, i32) {
    %c0_i32 = arith.constant 0 : i32
    %c0_i32_0 = arith.constant 0 : i32
    return %arg0, %c0_i32 : i32, i32
  }
  func.func @transform_1(%arg0: i32, %arg1: i32) -> (i32, i32) {
    %c0_i32 = arith.constant 0 : i32
    %c0_i32_0 = arith.constant 0 : i32
    return %arg1, %c0_i32 : i32, i32
  }
  func.func @transform_2(%arg0: i32, %arg1: i32) -> (i32, i32) {
    %c0_i32 = arith.constant 0 : i32
    %c0_i32_0 = arith.constant 0 : i32
    return %arg0, %c0_i32 : i32, i32
  }
  func.func @transform_3(%arg0: i32, %arg1: i32) -> i32 {
    %c0_i32 = arith.constant 0 : i32
    %c0_i32_0 = arith.constant 0 : i32
    return %c0_i32 : i32
  }
}

module attributes {stable_mosaic.version = 11 : i64} {
  func.func @_pair_sim_kernel(%arg0: i32, %arg1: memref<1xi32, #tpu.memory_space<smem>>, %arg2: memref<1xi32, #tpu.memory_space<smem>>, %arg3: memref<8x128xbf16, #tpu.memory_space<vmem>>, %arg4: memref<8x128xbf16, #tpu.memory_space<vmem>>, %arg5: memref<8x1xi32, #tpu.memory_space<vmem>>, %arg6: memref<1x8xi32, #tpu.memory_space<vmem>>, %arg7: memref<2xf32, #tpu.memory_space<smem>>, %arg8: memref<3xf32, #tpu.memory_space<smem>>) attributes {dimension_semantics = [#tpu.dimension_semantics<arbitrary>], iteration_bounds = array<i64: 1>, scalar_prefetch = 2 : i64, scratch_operands = 1 : i64, tpu.core_type = #tpu.core_type<tc>, window_params = [{transform_indices = @transform_0, window_bounds = array<i64: 8, 128>}, {transform_indices = @transform_1, window_bounds = array<i64: 8, 128>}, {transform_indices = @transform_2, window_bounds = array<i64: 8, 1>}, {transform_indices = @transform_3, window_bounds = array<i64: 1, 8>}, {transform_indices = @transform_4, window_bounds = array<i64: 2>}]} {
    %c0_i32 = arith.constant 0 : i32
    %0 = arith.cmpi eq, %arg0, %c0_i32 : i32
    %c0_i32_0 = arith.constant 0 : i32
    %1 = arith.cmpi eq, %arg0, %c0_i32_0 : i32
    %2 = arith.extui %1 : i1 to i32
    %c0_i32_1 = arith.constant 0 : i32
    %3 = arith.cmpi ne, %2, %c0_i32_1 : i32
    scf.if %3 {
      %cst_19 = arith.constant 0.000000e+00 : f32
      %c0_20 = arith.constant 0 : index
      %47 = memref.load %arg8[%c0_20] : memref<3xf32, #tpu.memory_space<smem>>
      memref.store %cst_19, %arg8[%c0_20] : memref<3xf32, #tpu.memory_space<smem>>
      %cst_21 = arith.constant 0.000000e+00 : f32
      %c1_22 = arith.constant 1 : index
      %48 = memref.load %arg8[%c1_22] : memref<3xf32, #tpu.memory_space<smem>>
      memref.store %cst_21, %arg8[%c1_22] : memref<3xf32, #tpu.memory_space<smem>>
      %cst_23 = arith.constant 0.000000e+00 : f32
      %c2_24 = arith.constant 2 : index
      %49 = memref.load %arg8[%c2_24] : memref<3xf32, #tpu.memory_space<smem>>
      memref.store %cst_23, %arg8[%c2_24] : memref<3xf32, #tpu.memory_space<smem>>
    } else {
    }
    %c0 = arith.constant 0 : index
    %c0_2 = arith.constant 0 : index
    %4 = vector.load %arg3[%c0, %c0_2] : memref<8x128xbf16, #tpu.memory_space<vmem>>, vector<8x128xbf16>
    %c0_3 = arith.constant 0 : index
    %c0_4 = arith.constant 0 : index
    %5 = vector.load %arg4[%c0_3, %c0_4] : memref<8x128xbf16, #tpu.memory_space<vmem>>, vector<8x128xbf16>
    %cst = arith.constant dense<0.000000e+00> : vector<8x8xf32>
    %6 = tpu.matmul %4, %5, %cst {dimension_numbers = #tpu.dot_dimension_numbers<[1], [1], [0], [0], [0, 0, 1, 0], [], []>} : vector<8x128xbf16>, vector<8x128xbf16>, vector<8x8xf32> -> vector<8x8xf32>
    %c0_5 = arith.constant 0 : index
    %c0_6 = arith.constant 0 : index
    %7 = vector.load %arg5[%c0_5, %c0_6] : memref<8x1xi32, #tpu.memory_space<vmem>>, vector<8x1xi32>
    %c0_7 = arith.constant 0 : index
    %c0_8 = arith.constant 0 : index
    %8 = vector.load %arg6[%c0_7, %c0_8] : memref<1x8xi32, #tpu.memory_space<vmem>>, vector<1x8xi32>
    %9 = vector.broadcast %7 : vector<8x1xi32> to vector<8x8xi32>
    %10 = vector.broadcast %8 : vector<1x8xi32> to vector<8x8xi32>
    %11 = arith.cmpi eq, %9, %10 : vector<8x8xi32>
    %12 = arith.extui %11 : vector<8x8xi1> to vector<8x8xi32>
    %13 = arith.sitofp %12 : vector<8x8xi32> to vector<8x8xf32>
    %14 = arith.index_cast %arg0 : i32 to index
    %15 = memref.load %arg1[%14] : memref<1xi32, #tpu.memory_space<smem>>
    %16 = arith.index_cast %arg0 : i32 to index
    %17 = memref.load %arg2[%16] : memref<1xi32, #tpu.memory_space<smem>>
    %18 = arith.cmpi eq, %15, %17 : i32
    %cst_9 = arith.constant 1.000000e+00 : f32
    %cst_10 = arith.constant 2.000000e+00 : f32
    %19 = arith.select %18, %cst_9, %cst_10 : f32
    %c0_11 = arith.constant 0 : index
    %20 = memref.load %arg8[%c0_11] : memref<3xf32, #tpu.memory_space<smem>>
    %21 = vector.shape_cast %6 : vector<8x8xf32> to vector<1x8x8xf32>
    %cst_12 = arith.constant dense<0.000000e+00> : vector<1xf32>
    %22 = vector.multi_reduction <add>, %21, %cst_12 [1, 2] : vector<1x8x8xf32> to vector<1xf32>
    %23 = vector.shape_cast %22 : vector<1xf32> to vector<1x1x1xf32>
    %24 = vector.extract %23[0, 0, 0] : f32 from vector<1x1x1xf32>
    %25 = arith.mulf %19, %24 : f32
    %26 = arith.addf %20, %25 : f32
    %c0_13 = arith.constant 0 : index
    %27 = memref.load %arg8[%c0_13] : memref<3xf32, #tpu.memory_space<smem>>
    memref.store %26, %arg8[%c0_13] : memref<3xf32, #tpu.memory_space<smem>>
    %c1 = arith.constant 1 : index
    %28 = memref.load %arg8[%c1] : memref<3xf32, #tpu.memory_space<smem>>
    %29 = arith.mulf %6, %13 : vector<8x8xf32>
    %30 = vector.shape_cast %29 : vector<8x8xf32> to vector<1x8x8xf32>
    %cst_14 = arith.constant dense<0.000000e+00> : vector<1xf32>
    %31 = vector.multi_reduction <add>, %30, %cst_14 [1, 2] : vector<1x8x8xf32> to vector<1xf32>
    %32 = vector.shape_cast %31 : vector<1xf32> to vector<1x1x1xf32>
    %33 = vector.extract %32[0, 0, 0] : f32 from vector<1x1x1xf32>
    %34 = arith.mulf %19, %33 : f32
    %35 = arith.addf %28, %34 : f32
    %c1_15 = arith.constant 1 : index
    %36 = memref.load %arg8[%c1_15] : memref<3xf32, #tpu.memory_space<smem>>
    memref.store %35, %arg8[%c1_15] : memref<3xf32, #tpu.memory_space<smem>>
    %c2 = arith.constant 2 : index
    %37 = memref.load %arg8[%c2] : memref<3xf32, #tpu.memory_space<smem>>
    %38 = vector.shape_cast %13 : vector<8x8xf32> to vector<1x8x8xf32>
    %cst_16 = arith.constant dense<0.000000e+00> : vector<1xf32>
    %39 = vector.multi_reduction <add>, %38, %cst_16 [1, 2] : vector<1x8x8xf32> to vector<1xf32>
    %40 = vector.shape_cast %39 : vector<1xf32> to vector<1x1x1xf32>
    %41 = vector.extract %40[0, 0, 0] : f32 from vector<1x1x1xf32>
    %42 = arith.mulf %19, %41 : f32
    %43 = arith.addf %37, %42 : f32
    %c2_17 = arith.constant 2 : index
    %44 = memref.load %arg8[%c2_17] : memref<3xf32, #tpu.memory_space<smem>>
    memref.store %43, %arg8[%c2_17] : memref<3xf32, #tpu.memory_space<smem>>
    %45 = arith.extui %0 : i1 to i32
    %c0_i32_18 = arith.constant 0 : i32
    %46 = arith.cmpi ne, %45, %c0_i32_18 : i32
    scf.if %46 {
      %c2_19 = arith.constant 2 : index
      %47 = memref.load %arg8[%c2_19] : memref<3xf32, #tpu.memory_space<smem>>
      %c1_20 = arith.constant 1 : index
      %48 = memref.load %arg8[%c1_20] : memref<3xf32, #tpu.memory_space<smem>>
      %49 = arith.divf %48, %47 : f32
      %c0_21 = arith.constant 0 : index
      %50 = memref.load %arg7[%c0_21] : memref<2xf32, #tpu.memory_space<smem>>
      memref.store %49, %arg7[%c0_21] : memref<2xf32, #tpu.memory_space<smem>>
      %c0_22 = arith.constant 0 : index
      %51 = memref.load %arg8[%c0_22] : memref<3xf32, #tpu.memory_space<smem>>
      %c1_23 = arith.constant 1 : index
      %52 = memref.load %arg8[%c1_23] : memref<3xf32, #tpu.memory_space<smem>>
      %53 = arith.subf %51, %52 : f32
      %cst_24 = arith.constant 6.400000e+01 : f32
      %54 = arith.subf %cst_24, %47 : f32
      %55 = arith.divf %53, %54 : f32
      %c1_25 = arith.constant 1 : index
      %56 = memref.load %arg7[%c1_25] : memref<2xf32, #tpu.memory_space<smem>>
      memref.store %55, %arg7[%c1_25] : memref<2xf32, #tpu.memory_space<smem>>
    } else {
    }
    return
  }
  func.func @transform_0(%arg0: i32, %arg1: memref<1xi32, #tpu.memory_space<smem>>, %arg2: memref<1xi32, #tpu.memory_space<smem>>) -> (i32, i32) {
    %0 = arith.index_cast %arg0 : i32 to index
    %1 = memref.load %arg1[%0] : memref<1xi32, #tpu.memory_space<smem>>
    %c0_i32 = arith.constant 0 : i32
    %c0_i32_0 = arith.constant 0 : i32
    return %1, %c0_i32 : i32, i32
  }
  func.func @transform_1(%arg0: i32, %arg1: memref<1xi32, #tpu.memory_space<smem>>, %arg2: memref<1xi32, #tpu.memory_space<smem>>) -> (i32, i32) {
    %0 = arith.index_cast %arg0 : i32 to index
    %1 = memref.load %arg2[%0] : memref<1xi32, #tpu.memory_space<smem>>
    %c0_i32 = arith.constant 0 : i32
    %c0_i32_0 = arith.constant 0 : i32
    return %1, %c0_i32 : i32, i32
  }
  func.func @transform_2(%arg0: i32, %arg1: memref<1xi32, #tpu.memory_space<smem>>, %arg2: memref<1xi32, #tpu.memory_space<smem>>) -> (i32, i32) {
    %0 = arith.index_cast %arg0 : i32 to index
    %1 = memref.load %arg1[%0] : memref<1xi32, #tpu.memory_space<smem>>
    %c0_i32 = arith.constant 0 : i32
    %c0_i32_0 = arith.constant 0 : i32
    return %1, %c0_i32 : i32, i32
  }
  func.func @transform_3(%arg0: i32, %arg1: memref<1xi32, #tpu.memory_space<smem>>, %arg2: memref<1xi32, #tpu.memory_space<smem>>) -> (i32, i32) {
    %0 = arith.index_cast %arg0 : i32 to index
    %1 = memref.load %arg2[%0] : memref<1xi32, #tpu.memory_space<smem>>
    %c0_i32 = arith.constant 0 : i32
    %c0_i32_0 = arith.constant 0 : i32
    return %c0_i32, %1 : i32, i32
  }
  func.func @transform_4(%arg0: i32, %arg1: memref<1xi32, #tpu.memory_space<smem>>, %arg2: memref<1xi32, #tpu.memory_space<smem>>) -> i32 {
    %c0_i32 = arith.constant 0 : i32
    %c0_i32_0 = arith.constant 0 : i32
    return %c0_i32 : i32
  }
}

</mosaic_0001>

<bundles_post_ra>
// kernel: self_loss_forward.3
= control target key start
LH: loop header
LB: loop body
LE: loop exit
PB: predicated region body
PF: predicated region fallthrough
CT: control target
= control target key end

     0   :  { %s376_s0 = inlined_call_operand.<no memory space> [shape: s32[1], index: 0, kind: input, shape index: {}, may-alias: {0,1}]   ;;  %s377_s1 = inlined_call_operand.<no memory space> [shape: s32[1], index: 1, kind: input, shape index: {}, may-alias: {0,1}]   ;;  %s378_s2 = inlined_call_operand.vmem [shape: bf16[8,128], index: 2, kind: input, shape index: {}, may-alias: {2,3}]   ;;  %s379_s3 = inlined_call_operand.vmem [shape: bf16[8,128], index: 3, kind: input, shape index: {}, may-alias: {2,3}]   ;;  %s380_s4 = inlined_call_operand.vmem [shape: s32[8,1], index: 4, kind: input, shape index: {}]   ;;  %s381_s5 = inlined_call_operand.vmem [shape: s32[1,8], index: 5, kind: input, shape index: {}]   ;;  %s382_s6 = inlined_call_operand.vmem [shape: f32[2], index: 6, kind: output, shape index: {}]  }
   0x1   :  { %p71_p0 = scmp.lt.s32.totalorder %s377_s1, 0  ;;  %p65_p1 = scmp.lt.s32.totalorder %s376_s0, 0 }
   0x2   :  { %13 = vsyncpa [#allocation7], 0  ;;  %v298_v0 = vmov 0   ;;  %v299_v6 = vmov 0.0   ;;  %vm127_vm1 = vcmask 64512   ;;  %p124_p2 = scmp.eq.s32.totalorder %s376_s0, %s377_s1  ;;  %s300_s12 = smov [#allocation6]  }
   0x3   :  { %278 = vset.pattern.permute.xlu0 %v298_v0  ;;  %s72_s27 = scalar_select %p71_p0, %s377_s1, 0 }
   0x4   :  { %s66_s30 = scalar_select %p65_p1, %s376_s0, 0 }
   0x5   :  { %s257_s7 = sshll.u32 %s72_s27, 2  ;;  %s85_s10 = scalar_lea.vmem %s381_s5, %s72_s27 }
   0x6   :  { %s74_s13 = scalar_lea.vmem %s379_s3, %s257_s7  ;;  %s256_s14 = sshll.u32 %s66_s30, 2  ;;  %v279_v4 = vld [vmem:[%s85_s10] ss:$0 sm:$0xff] }
   0x7   :  { %v99_v1 = vld [vmem:[%s74_s13] sm:$0xf]  ;;  %s258_s15 = sshll.u32 %s66_s30, 3  ;;  %s68_s21 = scalar_lea.vmem %s378_s2, %s256_s14 }
   0x8   :  { %107 = vmatpush.bf16.xpose.msra.mxu0 %v99_v1  ;;  %s80_s18 = scalar_lea.vmem %s380_s4, %s258_s15  ;;  %v98_v3 = vld [vmem:[%s68_s21] sm:$0xf]  ;;  %s225_s7 = sshll.u32 %s382_s6, 4  ;;  %s226_s7 = int_to_ptr.vmem [resolvable:$true] %s225_s7 }
   0x9   :  { %v113_v2 = vld [vmem:[%s80_s18] sm:$0xff]  ;;  %s125_s22 = scalar_select %p124_p2, 1.0, 2.0 }
   0xa   :  { %116 = vperm.xlu0 %278, %v113_v2  }
   0xf   :  { %108 = vmatmul.bf16.vlgmr.msra.gmra.mxu0 %v98_v3 }
  0x7c   :  { %v117_v5 = vpop.permute.xlu0 %116 }
  0x7d   :  { %vm119_vm0 = vcmp.eq.s32.totalorder %v117_v5, %v279_v4 }
  0x7e   :  { %v259_v7 = vsel %vm119_vm0, 1.0, %v299_v6 }
  0x7f   :  { %v159_v13 = vsel %vm127_vm1, %v259_v7, 0.0 }
  0x8c   :  { %v109_v8 = vpop.f32.mrf.mxu0 }
  0x8d   :  { %v128_v9 = vsel %vm127_vm1, %v109_v8, 0.0  ;;  %v143_v10 = vmul.f32 %v259_v7, %v109_v8 }
  0x8e   :  { %129 = vadd.xlane.f32.xlu0 %v128_v9 }
  0x8f   :  { %v144_v11 = vsel %vm127_vm1, %v143_v10, 0.0 }
  0x90   :  { %145 = vadd.xlane.f32.xlu1 %v144_v11 }
  0x94   :  { %v111_v12 = vpop.f32.mrf.mxu0 }
  0x98   :  { %160 = vadd.xlane.f32.xlu1 %v159_v13 }
 0x101   :  { %v130_v14 = vpop.xlane.xlu0 %129 }
 0x102   :  { %v131_v15 = vrot.slane %v130_v14, 4 }
 0x103   :  { %v146_v16 = vpop.xlane.xlu1 %145 }
 0x104   :  { %v132_v17 = vadd.f32 %v131_v15, %v130_v14  ;;  %v147_v18 = vrot.slane %v146_v16, 4 }
 0x106   :  { %v133_v19 = vrot.slane %v132_v17, 2  ;;  %v148_v20 = vadd.f32 %v147_v18, %v146_v16 }
 0x108   :  { %v149_v21 = vrot.slane %v148_v20, 2  ;;  %v134_v22 = vadd.f32 %v133_v19, %v132_v17 }
 0x10a   :  { %v135_v23 = vrot.slane %v134_v22, 1  ;;  %v150_v24 = vadd.f32 %v149_v21, %v148_v20 }
 0x10b   :  { %v161_v25 = vpop.xlane.xlu1 %160 }
 0x10c   :  { %v162_v26 = vrot.slane %v161_v25, 4  ;;  %v136_v27 = vadd.f32 %v135_v23, %v134_v22  ;;  %v151_v28 = vrot.slane %v150_v24, 1 }
 0x10e   :  { %v163_v29 = vadd.f32 %v162_v26, %v161_v25  ;;  %265 = vpush %v136_v27  ;;  %v152_v30 = vadd.f32 %v151_v28, %v150_v24 }
 0x110   :  { %v164_v31 = vrot.slane %v163_v29, 2  ;;  %267 = vpush %v152_v30 }
 0x112   :  { %v165_v32 = vadd.f32 %v164_v31, %v163_v29 }
 0x114   :  { %v166_v33 = vrot.slane %v165_v32, 1 }
 0x116   :  { %v167_v34 = vadd.f32 %v166_v33, %v165_v32 }
 0x118   :  { %269 = vpush %v167_v34 }
 0x13f   :  { %s266_s23 = spop %265 }
 0x140   :  { %s138_s24 = smul.f32 %s266_s23, %s125_s22 }
 0x141   :  { %s268_s25 = spop %267 }
 0x142   :  { %s366_s26 = smul.f32 %s268_s25, %s125_s22 }
 0x144   :  { %s369_s27 = ssub.f32 %s138_s24, %s366_s26 }
 0x149   :  { %s270_s28 = spop %269 }
 0x14a   :  { %s169_s29 = smul.f32 %s270_s28, %s125_s22 }
 0x14c   :  { %v178_v35 = vstv %s169_s29  ;;  %s200_s30 = ssub.f32 64.0, %s169_s29 }
 0x14d   :  { %280 = vrcp.f32 %v178_v35  ;;  %v190_v42 = vand.u32 2147483648, %v178_v35  ;;  %v188_v45 = vand.u32 2147483647, %v178_v35  ;;  %vm184_vm3 = vweird.f32 %v178_v35 }
 0x14e   :  { %v201_v36 = vstv %s200_s30 }
 0x14f   :  { %282 = vrcp.f32 %v201_v36  ;;  %v213_v46 = vand.u32 2147483648, %v201_v36  ;;  %v211_v49 = vand.u32 2147483647, %v201_v36  ;;  %v191_v50 = vor.u32 1.1754944e-38, %v190_v42 }
 0x150   :  { %vm189_vm6 = vcmp.eq.f32.partialorder %v188_v45, 8.507059e+37  ;;  %vm207_vm7 = vweird.f32 %v201_v36 }
 0x151   :  { %v214_v54 = vor.u32 1.1754944e-38, %v213_v46  ;;  %vm212_vm9 = vcmp.eq.f32.partialorder %v211_v49, 8.507059e+37 }
 0x153   :  { %v281_v37 = vpop.eup %280 }
 0x154   :  { %v180_v38 = vmul.f32 %v281_v37, %v178_v35  ;;  %vm185_vm2 = vweird.f32 %v281_v37 }
 0x155   :  { %v283_v39 = vpop.eup %282  ;;  %vm186_vm5 = vmor %vm184_vm3, %vm185_vm2 }
 0x156   :  { %v181_v40 = vsub.f32 1.0, %v180_v38  ;;  %v203_v41 = vmul.f32 %v283_v39, %v201_v36  ;;  %vm208_vm4 = vweird.f32 %v283_v39 }
 0x157   :  { %vm209_vm8 = vmor %vm207_vm7, %vm208_vm4 }
 0x158   :  { %v204_v43 = vsub.f32 1.0, %v203_v41  ;;  %v182_v44 = vmul.f32 %v281_v37, %v181_v40 }
 0x15a   :  { %v183_v47 = vadd.f32 %v281_v37, %v182_v44  ;;  %v205_v48 = vmul.f32 %v283_v39, %v204_v43 }
 0x15c   :  { %v187_v51 = vsel %vm186_vm5, %v281_v37, %v183_v47  ;;  %v206_v52 = vadd.f32 %v283_v39, %v205_v48 }
 0x15d   :  { %v192_v53 = vsel %vm189_vm6, %v191_v50, %v187_v51 }
 0x15e   :  { %271 = vpush %v192_v53  ;;  %v210_v55 = vsel %vm209_vm8, %v283_v39, %v206_v52 }
 0x15f   :  { %v215_v56 = vsel %vm212_vm9, %v214_v54, %v210_v55 }
 0x160   :  { %273 = vpush %v215_v56 }
 0x18f   :  { %s272_s8 = spop %271 }
 0x190   :  { %s194_s9 = smul.f32 %s272_s8, %s366_s26 }
 0x191   :  { %s274_s10 = spop %273 }
 0x192   :  { %196 = sst [smem:[#allocation6]] %s194_s9  ;;  %s217_s11 = smul.f32 %s274_s10, %s369_s27 }
 0x194   :  { %219 = sst [smem:[#allocation6 + $0x1]] %s217_s11 }
 0x195   :  { %228 = dma.smem_to_vmem %s300_s12, 16, %s226_s7, [#allocation7]  }
 0x196   :  { %296 = dma.done.wait [#allocation7], 16  }
 0x197   :  { %297 = vsyncadd [#allocation7], 4294967280 }
 0x198   :  { %233 = sfence }
 0x199   :  { %234 = vsyncpa [#allocation7], 1 }

// kernel: self_loss_forward.2
= control target key start
LH: loop header
LB: loop body
LE: loop exit
PB: predicated region body
PF: predicated region fallthrough
CT: control target
= control target key end

     0   :  { %v321_v1 = vmov 0   ;;  %s394_s0 = inlined_call_operand.vmem [shape: bf16[8,128], index: 0, kind: input, shape index: {}]   ;;  %s395_s1 = inlined_call_operand.vmem [shape: bf16[32,128], index: 1, kind: input, shape index: {}]   ;;  %s396_s2 = inlined_call_operand.vmem [shape: s32[8,1], index: 2, kind: input, shape index: {}]   ;;  %s397_s3 = inlined_call_operand.vmem [shape: f32[4], index: 3, kind: output, shape index: {}]  }
   0x1   :  { %v274_v0 = vld [vmem:[%s395_s1 + $0x8] sm:$0xff]  ;;  %296 = vset.pattern.permute.xlu0 %v321_v1  ;;  %v42_v2 = vld [vmem:[%s396_s2] sm:$0xff] }
   0x2   :  { %8 = vsyncpa [#allocation7], 0  ;;  %61 = vmatpush.bf16.xpose.msra.mxu0 %v274_v0  ;;  %76 = vperm.xlu0 %296, %v42_v2   ;;  %v273_v3 = vld [vmem:[%s395_s1] sm:$0xff]  ;;  %v71_v5 = vlaneseq  ;;  %vm81_vm1 = vcmask 261120   ;;  %vm33_vm2 = vcmask 7168   ;;  %v322_v23 = vmov 0.0  }
   0x3   :  { %v37_v4 = vld [vmem:[%s394_s0] sm:$0xf]  ;;  %34 = vst.msk [vmem:[#allocation2] sm:$0xff] %vm33_vm2, %v322_v23  ;;  %v323_v24 = vmov -2.0   ;;  %s326_s21 = smov 1.0   ;;  %s245_s25 = sshll.u32 %s397_s3, 4  ;;  %s246_s25 = int_to_ptr.vmem [resolvable:$true] %s245_s25 }
   0x4   :  { %v72_v6 = vand.u32 127, %v71_v5  ;;  %35 = vst.msk [vmem:[#allocation3] sm:$0xff] %vm33_vm2, %v322_v23  ;;  %s327_s8 = smov [#allocation6]  }
   0x5   :  { %36 = vst.msk [vmem:[#allocation4] sm:$0xff] %vm33_vm2, %v323_v24 }
   0xa   :  { %62 = vmatpush.bf16.xpose.msra.mxu0 %v273_v3  ;;  %v79_v25 = vld [vmem:[#allocation2] sm:$0xff] }
   0xb   :  { %v88_v38 = vld [vmem:[#allocation3] sm:$0xff] }
   0xc   :  { %v98_v31 = vld [vmem:[#allocation4] sm:$0xff] }
  0x11   :  { %63 = vmatmul.bf16.vlgmr.msra.gmra.mxu0 %v37_v4 }
  0x74   :  { %v77_v7 = vpop.permute.xlu0 %76 }
  0x75   :  { %vm78_vm0 = vcmp.eq.s32.totalorder %v72_v6, %v77_v7 }
  0x8e   :  { %v64_v8 = vpop.f32.mrf.mxu0 }
  0x8f   :  { %v263_v9 = vclamps-f32 %v64_v8, 1.0  ;;  %v80_v10 = vsel %vm78_vm0, %v64_v8, 0.0 }
  0x90   :  { %v82_v11 = vsel %vm81_vm1, %v80_v10, 0.0 }
  0x91   :  { %83 = vadd.xlane.f32.xlu1 %v82_v11  ;;  %v106_v12 = vsel %vm78_vm0, %v263_v9, 0.0  ;;  %v89_v13 = vmul.f32 10.0, %v263_v9  ;;  %v99_v16 = vsel %vm78_vm0, -2.0, %v263_v9  ;;  %v121_v19 = vsel %vm81_vm1, %v263_v9, 0.0 }
  0x92   :  { %v107_v14 = vsel %vm81_vm1, %v106_v12, 0.0  ;;  %v100_v18 = vsel %vm81_vm1, %v99_v16, -inf  ;;  %v324_v11 = vmov 8.0   ;;  %v325_v12 = vmov 248.0  }
  0x93   :  { %108 = vadd.xlane.f32.xlu2 %v107_v14  ;;  %v90_v15 = vmul.f32 1.442695, %v89_v13 }
  0x95   :  { %297 = vpow2.f32 %v90_v15 }
  0x96   :  { %v66_v17 = vpop.f32.mrf.mxu0 }
  0x99   :  { %101 = vmax.xlane.f32.xlu1 %v100_v18 }
  0x9b   :  { %v298_v20 = vpop.eup %297  ;;  %122 = vadd.xlane.f32.xlu2 %v121_v19 }
  0x9c   :  { %v92_v21 = vsel %vm78_vm0, 0.0, %v298_v20 }
  0x9d   :  { %v93_v22 = vsel %vm81_vm1, %v92_v21, 0.0 }
  0x9e   :  { %94 = vadd.xlane.f32.xlu0 %v93_v22 }
 0x104   :  { %v84_v26 = vpop.xlane.xlu1 %83 }
 0x105   :  { %v85_v27 = vadd.f32 %v84_v26, %v79_v25 }
 0x106   :  { %v109_v28 = vpop.xlane.xlu2 %108 }
 0x107   :  { %87 = vst.msk [vmem:[#allocation2] sm:$0xff] %vm33_vm2, %v85_v27  ;;  %v110_v29 = vrot.slane %v109_v28, 4 }
 0x109   :  { %v111_v30 = vadd.f32 %v110_v29, %v109_v28 }
 0x10b   :  { %v112_v32 = vrot.slane %v111_v30, 2 }
 0x10c   :  { %v102_v33 = vpop.xlane.xlu1 %101 }
 0x10d   :  { %v103_v34 = vmax.f32 %v98_v31, %v102_v33  ;;  %v113_v35 = vadd.f32 %v112_v32, %v111_v30 }
 0x10e   :  { %v123_v36 = vpop.xlane.xlu2 %122  ;;  %v137_v44 = vld [vmem:[#allocation2] sm:$0xff] }
 0x10f   :  { %104 = vst.msk [vmem:[#allocation4] sm:$0xff] %vm33_vm2, %v103_v34  ;;  %v124_v37 = vrot.slane %v123_v36, 4  ;;  %v114_v39 = vrot.slane %v113_v35, 1  ;;  %v266_v46 = vadd.f32 -2.0, %v137_v44 }
 0x111   :  { %v125_v40 = vadd.f32 %v124_v37, %v123_v36  ;;  %v95_v41 = vpop.xlane.xlu0 %94  ;;  %v115_v42 = vadd.f32 %v114_v39, %v113_v35  ;;  %v144_v56 = vsub.f32 0.0, %v266_v46 }
 0x112   :  { %v96_v43 = vadd.f32 %v95_v41, %v88_v38 }
 0x113   :  { %v126_v45 = vrot.slane %v125_v40, 2  ;;  %275 = vpush %v115_v42 }
 0x114   :  { %97 = vst.msk [vmem:[#allocation3] sm:$0xff] %vm33_vm2, %v96_v43 }
 0x115   :  { %v127_v47 = vadd.f32 %v126_v45, %v125_v40 }
 0x116   :  { %v142_v48 = vld [vmem:[#allocation4] sm:$0xff] }
 0x117   :  { %vm143_vm3 = vcmp.gt.f32.partialorder %v142_v48, %v266_v46  ;;  %v128_v49 = vrot.slane %v127_v47, 1 }
 0x118   :  { %v268_v50 = vsel %vm143_vm3, 1.0, %v322_v23 }
 0x119   :  { %v165_v51 = vsel %vm33_vm2, %v268_v50, 0.0  ;;  %v129_v52 = vadd.f32 %v128_v49, %v127_v47 }
 0x11a   :  { %166 = vadd.xlane.f32.xlu2 %v165_v51 }
 0x11b   :  { %277 = vpush %v129_v52  ;;  %v139_v53 = vld [vmem:[#allocation3] sm:$0xff] }
 0x11c   :  { %299 = vlog2.f32 %v139_v53 }
 0x11d   :  { %301 = vrcp.f32 %v324_v11 }
 0x11e   :  { %303 = vrcp.f32 %v325_v12 }
 0x122   :  { %v300_v54 = vpop.eup %299 }
 0x123   :  { %v141_v55 = vmul.f32 0.6931472, %v300_v54  ;;  %v302_v13 = vpop.eup %301 }
 0x124   :  { %v304_v14 = vpop.eup %303  ;;  %v204_v16 = vmul.f32 8.0, %v302_v13  ;;  %vm208_vm5 = vweird.f32 %v302_v13 }
 0x125   :  { %v145_v57 = vmul.f32 0.1, %v141_v55  ;;  %v230_v17 = vmul.f32 248.0, %v304_v14  ;;  %vm234_vm7 = vweird.f32 %v304_v14 }
 0x126   :  { %v205_v18 = vsub.f32 1.0, %v204_v16 }
 0x127   :  { %v146_v58 = vadd.f32 %v145_v57, %v144_v56  ;;  %v231_v19 = vsub.f32 1.0, %v230_v17 }
 0x128   :  { %v206_v22 = vmul.f32 %v302_v13, %v205_v18 }
 0x129   :  { %v147_v59 = vsel %vm143_vm3, %v146_v58, 0.0  ;;  %v232_v23 = vmul.f32 %v304_v14, %v231_v19 }
 0x12a   :  { %v149_v60 = vsel %vm33_vm2, %v147_v59, 0.0  ;;  %v207_v28 = vadd.f32 %v302_v13, %v206_v22 }
 0x12b   :  { %150 = vadd.xlane.f32.xlu1 %v149_v60  ;;  %v233_v29 = vadd.f32 %v304_v14, %v232_v23 }
 0x12c   :  { %v209_v33 = vsel %vm208_vm5, %v302_v13, %v207_v28 }
 0x12d   :  { %v235_v35 = vsel %vm234_vm7, %v304_v14, %v233_v29 }
 0x144   :  { %s377_s0 = spop %275 }
 0x14c   :  { %s379_s1 = spop %277 }
 0x14d   :  { %s228_s26 = ssub.f32 %s379_s1, %s377_s0 }
 0x18d   :  { %v167_v61 = vpop.xlane.xlu2 %166 }
 0x18e   :  { %v168_v62 = vrot.slane %v167_v61, 4 }
 0x190   :  { %v169_v63 = vadd.f32 %v168_v62, %v167_v61 }
 0x192   :  { %v170_v0 = vrot.slane %v169_v63, 2 }
 0x194   :  { %v171_v4 = vadd.f32 %v170_v0, %v169_v63 }
 0x196   :  { %v172_v7 = vrot.slane %v171_v4, 1 }
 0x198   :  { %v173_v10 = vadd.f32 %v172_v7, %v171_v4 }
 0x19e   :  { %v151_v1 = vpop.xlane.xlu1 %150 }
 0x19f   :  { %v152_v2 = vrot.slane %v151_v1, 4 }
 0x1a1   :  { %v153_v3 = vadd.f32 %v152_v2, %v151_v1 }
 0x1a3   :  { %v154_v5 = vrot.slane %v153_v3, 2 }
 0x1a5   :  { %v155_v6 = vadd.f32 %v154_v5, %v153_v3 }
 0x1a7   :  { %v156_v8 = vrot.slane %v155_v6, 1 }
 0x1a9   :  { %v157_v9 = vadd.f32 %v156_v8, %v155_v6 }
 0x1ab   :  { %279 = vpush %v157_v9 }
 0x1ac   :  { %281 = vpush %v173_v10 }
 0x1dc   :  { %s381_s2 = spop %279 }
 0x1dd   :  { %s383_s20 = spop %281 }
 0x1de   :  { %s182_s22 = smax.f32 %s326_s21, %s383_s20  ;;  %s202_s27 = ssub.f32 8.0, %s383_s20 }
 0x1df   :  { %v183_v15 = vstv %s182_s22 }
 0x1e0   :  { %305 = vrcp.f32 %v183_v15  ;;  %v195_v25 = vand.u32 2147483648, %v183_v15  ;;  %v193_v27 = vand.u32 2147483647, %v183_v15  ;;  %vm189_vm6 = vweird.f32 %v183_v15 }
 0x1e2   :  { %v196_v31 = vor.u32 1.1754944e-38, %v195_v25  ;;  %vm194_vm9 = vcmp.eq.f32.partialorder %v193_v27, 8.507059e+37 }
 0x1e6   :  { %v306_v20 = vpop.eup %305 }
 0x1e7   :  { %v185_v21 = vmul.f32 %v306_v20, %v183_v15  ;;  %vm190_vm4 = vweird.f32 %v306_v20 }
 0x1e8   :  { %vm191_vm8 = vmor %vm189_vm6, %vm190_vm4 }
 0x1e9   :  { %v186_v24 = vsub.f32 1.0, %v185_v21 }
 0x1eb   :  { %v187_v26 = vmul.f32 %v306_v20, %v186_v24 }
 0x1ed   :  { %v188_v30 = vadd.f32 %v306_v20, %v187_v26 }
 0x1ef   :  { %v192_v32 = vsel %vm191_vm8, %v306_v20, %v188_v30 }
 0x1f0   :  { %v197_v34 = vsel %vm194_vm9, %v196_v31, %v192_v32 }
 0x1f1   :  { %283 = vpush %v197_v34 }
 0x1f2   :  { %285 = vpush %v209_v33 }
 0x1f3   :  { %287 = vpush %v235_v35 }
 0x222   :  { %s284_s28 = spop %283 }
 0x223   :  { %s199_s29 = smul.f32 %s284_s28, %s381_s2  ;;  %s286_s30 = spop %285 }
 0x224   :  { %s211_s4 = smul.f32 %s286_s30, %s202_s27  ;;  %s288_s5 = spop %287 }
 0x225   :  { %201 = sst [smem:[#allocation6]] %s199_s29  ;;  %s223_s6 = smul.f32 %s286_s30, %s377_s0 }
 0x226   :  { %213 = sst [smem:[#allocation6 + $0x1]] %s211_s4  ;;  %s237_s7 = smul.f32 %s288_s5, %s228_s26 }
 0x227   :  { %225 = sst [smem:[#allocation6 + $0x2]] %s223_s6 }
 0x228   :  { %239 = sst [smem:[#allocation6 + $0x3]] %s237_s7 }
 0x229   :  { %248 = dma.smem_to_vmem %s327_s8, 16, %s246_s25, [#allocation7]  }
 0x22a   :  { %319 = dma.done.wait [#allocation7], 16  }
 0x22b   :  { %320 = vsyncadd [#allocation7], 4294967280 }
 0x22c   :  { %253 = sfence }
 0x22d   :  { %254 = vsyncpa [#allocation7], 1 }

</bundles_post_ra>
